<compile_context>
chip_gen: v7x
topology: tpu7x:2x2x1
jax: 0.10.0
libtpu: 0.0.40
codegen_flags: <defaults>
</compile_context>

<pallas_src>
import jax
import jax.numpy as jnp
from jax.experimental import pallas as pl
from jax.experimental.pallas import tpu as pltpu

# ---- inner-model dimensions (128-aligned so every tile is (8,128)-friendly) ----
D_IN = 128         # input features
HIDDEN = 128       # hidden features (layer whose output is hooked / masked)
D_OUT = 128        # output features (lane-dense output store)
TM = 128           # batch rows per grid step (fills the MXU M dimension)
N_BATCH_TILES = 2  # total batch = TM * N_BATCH_TILES = 256
N_MASKS = 4        # number of hook masks evaluated in the sweep


def hooked_mlp_kernel(x_ref, w1_ref, b1_ref, masks_ref, w2_ref, b2_ref, o_ref):
    """One batch-tile evaluation of the full hooked mask sweep.

    x:     [TM, D_IN]          bf16 (VMEM)
    w1:    [D_IN, HIDDEN]      bf16 (VMEM, resident)
    b1:    [1, HIDDEN]         f32  (VMEM, resident)
    masks: [N_MASKS, HIDDEN]   f32  (VMEM, resident -- ALL hook masks)
    w2:    [HIDDEN, D_OUT]     bf16 (VMEM, resident)
    b2:    [1, D_OUT]          f32  (VMEM, resident)
    out:   [N_MASKS, TM, D_OUT] bf16
    """
    n_masks = masks_ref.shape[0]
    tm = x_ref.shape[0]

    # --- layer 1 (nn.Linear): computed ONCE per batch tile (hoisted out of
    # the per-mask work). bf16 operands, f32 accumulation on the MXU.
    h = jnp.dot(x_ref[...], w1_ref[...], preferred_element_type=jnp.float32)
    h = h + b1_ref[...]                                   # [TM, HIDDEN] f32

    # --- forward hook: mask the layer-1 OUTPUT (pre-ReLU, matching
    # register_forward_hook semantics) for every mask at once (VPU broadcast,
    # fully unrolled -> free filler under MXU slack).
    hm = h[None, :, :] * masks_ref[...][:, None, :]       # [N_MASKS, TM, HIDDEN]

    # --- activation
    hm = jnp.maximum(hm, 0.0)

    # --- layer 2 (nn.Linear): one M-stacked matmul (M = N_MASKS*TM = 512)
    # instead of N_MASKS separate 128x128 dots — amortizes the w2 push/drain.
    hm2 = hm.astype(w2_ref.dtype).reshape(n_masks * tm, HIDDEN)
    out = jnp.dot(hm2, w2_ref[...], preferred_element_type=jnp.float32)
    out = out + b2_ref[...]                               # [N_MASKS*TM, D_OUT]

    # lane-dense bf16 store of the whole (N_MASKS, TM, D_OUT) slab
    o_ref[...] = out.reshape(n_masks, tm, D_OUT).astype(o_ref.dtype)


def hooked_model_forward(x, w1, b1, masks, w2, b2, *, tm=TM):
    """Evaluate the hooked forward for every (batch tile, mask) pair in one call.

    Returns [n_masks, B, D_OUT] bf16: out[m] is HookedModel.forward(x) with
    mask m applied by the hook on layer 1's output.
    """
    B = x.shape[0]
    n_masks = masks.shape[0]
    n_batch_tiles = B // tm
    assert n_batch_tiles * tm == B

    # bf16 matmul operands (native MXU path); biases/masks/accumulation stay f32.
    x_bf = x.astype(jnp.bfloat16)
    w1_bf = w1.astype(jnp.bfloat16)
    w2_bf = w2.astype(jnp.bfloat16)

    return pl.pallas_call(
        hooked_mlp_kernel,
        out_shape=jax.ShapeDtypeStruct((n_masks, B, D_OUT), jnp.bfloat16),
        grid_spec=pltpu.PrefetchScalarGridSpec(
            num_scalar_prefetch=0,
            grid=(n_batch_tiles,),                         # 2 big steps, not 8 tiny ones
            in_specs=[
                pl.BlockSpec((tm, D_IN), lambda b: (b, 0)),          # x tile
                pl.BlockSpec((D_IN, HIDDEN), lambda b: (0, 0)),      # w1 resident
                pl.BlockSpec((1, HIDDEN), lambda b: (0, 0)),         # b1 resident
                pl.BlockSpec((n_masks, HIDDEN), lambda b: (0, 0)),   # ALL masks resident
                pl.BlockSpec((HIDDEN, D_OUT), lambda b: (0, 0)),     # w2 resident
                pl.BlockSpec((1, D_OUT), lambda b: (0, 0)),          # b2 resident
            ],
            out_specs=pl.BlockSpec((n_masks, tm, D_OUT), lambda b: (0, b, 0)),
        ),
        compiler_params=pltpu.CompilerParams(
            # even 2-step parallel grid -> clean split across v7x's 2 TensorCores
            dimension_semantics=("parallel",),
        ),
    )(x_bf, w1_bf, b1, masks, w2_bf, b2)


def reference_forward(x, w1, b1, masks, w2, b2):
    """Pure-JAX reference of the hooked sweep (same bf16 operand casts / bf16 out)."""
    h = jnp.dot(x.astype(jnp.bfloat16), w1.astype(jnp.bfloat16),
                preferred_element_type=jnp.float32) + b1
    h = h[None, :, :] * masks[:, None, :]          # hook: mask layer-1 output
    h = jnp.maximum(h, 0.0)
    out = jnp.einsum('mbh,hd->mbd', h.astype(jnp.bfloat16),
                     w2.astype(jnp.bfloat16),
                     preferred_element_type=jnp.float32) + b2
    return out.astype(jnp.bfloat16)


if __name__ == "__main__":
    key = jax.random.PRNGKey(0)
    k_x, k_w1, k_b1, k_w2, k_b2, k_m = jax.random.split(key, 6)

    B = TM * N_BATCH_TILES
    x = jax.random.normal(k_x, (B, D_IN), dtype=jnp.float32)
    w1 = jax.random.normal(k_w1, (D_IN, HIDDEN), dtype=jnp.float32) * 0.1
    b1 = jax.random.normal(k_b1, (1, HIDDEN), dtype=jnp.float32) * 0.1
    w2 = jax.random.normal(k_w2, (HIDDEN, D_OUT), dtype=jnp.float32) * 0.1
    b2 = jax.random.normal(k_b2, (1, D_OUT), dtype=jnp.float32) * 0.1
    # sweep of binary neuron masks for the hook on the hidden layer
    masks = (jax.random.uniform(k_m, (N_MASKS, HIDDEN)) > 0.5).astype(jnp.float32)

    out = hooked_model_forward(x, w1, b1, masks, w2, b2)
    out = jax.block_until_ready(out)

    ref = reference_forward(x, w1, b1, masks, w2, b2)
    assert out.shape == (N_MASKS, B, D_OUT)
    assert jnp.allclose(out.astype(jnp.float32), ref.astype(jnp.float32),
                        atol=5e-2, rtol=5e-2)

    # TODO(synk): apply_hook / remove_hooks / get_module are runtime
    # hook-management APIs (mutating Python state), not tensor compute; only
    # the hooked forward pass (mask sweep) is expressed as a kernel.

    print("KERNEL_OK")
</pallas_src>

<mosaic_0001>
module attributes {stable_mosaic.version = 11 : i64} {
  func.func @hooked_mlp_kernel(%arg0: i32, %arg1: memref<128x128xbf16, #tpu.memory_space<vmem>>, %arg2: memref<128x128xbf16, #tpu.memory_space<vmem>>, %arg3: memref<1x128xf32, #tpu.memory_space<vmem>>, %arg4: memref<4x128xf32, #tpu.memory_space<vmem>>, %arg5: memref<128x128xbf16, #tpu.memory_space<vmem>>, %arg6: memref<1x128xf32, #tpu.memory_space<vmem>>, %arg7: memref<4x128x128xbf16, #tpu.memory_space<vmem>>) attributes {dimension_semantics = [#tpu.dimension_semantics<parallel>], iteration_bounds = array<i64: 2>, scalar_prefetch = 0 : i64, scratch_operands = 0 : i64, tpu.core_type = #tpu.core_type<tc>, window_params = [{transform_indices = @transform_0, window_bounds = array<i64: 128, 128>}, {pipeline_mode = #tpu.pipeline_mode<synchronous>, transform_indices = @transform_1, window_bounds = array<i64: 128, 128>}, {pipeline_mode = #tpu.pipeline_mode<synchronous>, transform_indices = @transform_2, window_bounds = array<i64: 1, 128>}, {pipeline_mode = #tpu.pipeline_mode<synchronous>, transform_indices = @transform_3, window_bounds = array<i64: 4, 128>}, {pipeline_mode = #tpu.pipeline_mode<synchronous>, transform_indices = @transform_4, window_bounds = array<i64: 128, 128>}, {pipeline_mode = #tpu.pipeline_mode<synchronous>, transform_indices = @transform_5, window_bounds = array<i64: 1, 128>}, {transform_indices = @transform_6, window_bounds = array<i64: 4, 128, 128>}]} {
    %c0 = arith.constant 0 : index
    %c0_0 = arith.constant 0 : index
    %0 = vector.load %arg1[%c0, %c0_0] : memref<128x128xbf16, #tpu.memory_space<vmem>>, vector<128x128xbf16>
    %c0_1 = arith.constant 0 : index
    %c0_2 = arith.constant 0 : index
    %1 = vector.load %arg2[%c0_1, %c0_2] : memref<128x128xbf16, #tpu.memory_space<vmem>>, vector<128x128xbf16>
    %cst = arith.constant dense<0.000000e+00> : vector<128x128xf32>
    %2 = tpu.matmul %0, %1, %cst {dimension_numbers = #tpu.dot_dimension_numbers<[1], [0], [0], [1], [0, 0, 1, 1], [], []>} : vector<128x128xbf16>, vector<128x128xbf16>, vector<128x128xf32> -> vector<128x128xf32>
    %c0_3 = arith.constant 0 : index
    %c0_4 = arith.constant 0 : index
    %3 = vector.load %arg3[%c0_3, %c0_4] : memref<1x128xf32, #tpu.memory_space<vmem>>, vector<1x128xf32>
    %4 = vector.broadcast %3 : vector<1x128xf32> to vector<128x128xf32>
    %5 = arith.addf %2, %4 : vector<128x128xf32>
    %6 = vector.shape_cast %5 : vector<128x128xf32> to vector<1x128x128xf32>
    %c0_5 = arith.constant 0 : index
    %c0_6 = arith.constant 0 : index
    %7 = vector.load %arg4[%c0_5, %c0_6] : memref<4x128xf32, #tpu.memory_space<vmem>>, vector<4x128xf32>
    %8 = vector.shape_cast %7 : vector<4x128xf32> to vector<4x1x128xf32>
    %9 = vector.broadcast %6 : vector<1x128x128xf32> to vector<4x128x128xf32>
    %10 = vector.broadcast %8 : vector<4x1x128xf32> to vector<4x128x128xf32>
    %11 = arith.mulf %9, %10 : vector<4x128x128xf32>
    %cst_7 = arith.constant 0.000000e+00 : f32
    %12 = vector.broadcast %cst_7 : f32 to vector<4x128x128xf32>
    %13 = arith.maximumf %11, %12 : vector<4x128x128xf32>
    %14 = arith.truncf %13 : vector<4x128x128xf32> to vector<4x128x128xbf16>
    %15 = vector.shape_cast %14 : vector<4x128x128xbf16> to vector<512x128xbf16>
    %c0_8 = arith.constant 0 : index
    %c0_9 = arith.constant 0 : index
    %16 = vector.load %arg5[%c0_8, %c0_9] : memref<128x128xbf16, #tpu.memory_space<vmem>>, vector<128x128xbf16>
    %cst_10 = arith.constant dense<0.000000e+00> : vector<512x128xf32>
    %17 = tpu.matmul %15, %16, %cst_10 {dimension_numbers = #tpu.dot_dimension_numbers<[1], [0], [0], [1], [0, 0, 1, 1], [], []>} : vector<512x128xbf16>, vector<128x128xbf16>, vector<512x128xf32> -> vector<512x128xf32>
    %c0_11 = arith.constant 0 : index
    %c0_12 = arith.constant 0 : index
    %18 = vector.load %arg6[%c0_11, %c0_12] : memref<1x128xf32, #tpu.memory_space<vmem>>, vector<1x128xf32>
    %19 = vector.broadcast %18 : vector<1x128xf32> to vector<512x128xf32>
    %20 = arith.addf %17, %19 : vector<512x128xf32>
    %21 = vector.shape_cast %20 : vector<512x128xf32> to vector<4x128x128xf32>
    %22 = arith.truncf %21 : vector<4x128x128xf32> to vector<4x128x128xbf16>
    %c0_13 = arith.constant 0 : index
    %c0_14 = arith.constant 0 : index
    %c0_15 = arith.constant 0 : index
    %23 = vector.load %arg7[%c0_13, %c0_14, %c0_15] : memref<4x128x128xbf16, #tpu.memory_space<vmem>>, vector<4x128x128xbf16>
    tpu.vector_store %arg7[%c0_13, %c0_14, %c0_15], %22 {strides = array<i32>} : memref<4x128x128xbf16, #tpu.memory_space<vmem>>, vector<4x128x128xbf16>,
    return
  }
  func.func @transform_0(%arg0: i32) -> (i32, i32) {
    %c0_i32 = arith.constant 0 : i32
    %c0_i32_0 = arith.constant 0 : i32
    return %arg0, %c0_i32 : i32, i32
  }
  func.func @transform_1(%arg0: i32) -> (i32, i32) {
    %c0_i32 = arith.constant 0 : i32
    %c0_i32_0 = arith.constant 0 : i32
    %c0_i32_1 = arith.constant 0 : i32
    return %c0_i32, %c0_i32_0 : i32, i32
  }
  func.func @transform_2(%arg0: i32) -> (i32, i32) {
    %c0_i32 = arith.constant 0 : i32
    %c0_i32_0 = arith.constant 0 : i32
    %c0_i32_1 = arith.constant 0 : i32
    return %c0_i32, %c0_i32_0 : i32, i32
  }
  func.func @transform_3(%arg0: i32) -> (i32, i32) {
    %c0_i32 = arith.constant 0 : i32
    %c0_i32_0 = arith.constant 0 : i32
    %c0_i32_1 = arith.constant 0 : i32
    return %c0_i32, %c0_i32_0 : i32, i32
  }
  func.func @transform_4(%arg0: i32) -> (i32, i32) {
    %c0_i32 = arith.constant 0 : i32
    %c0_i32_0 = arith.constant 0 : i32
    %c0_i32_1 = arith.constant 0 : i32
    return %c0_i32, %c0_i32_0 : i32, i32
  }
  func.func @transform_5(%arg0: i32) -> (i32, i32) {
    %c0_i32 = arith.constant 0 : i32
    %c0_i32_0 = arith.constant 0 : i32
    %c0_i32_1 = arith.constant 0 : i32
    return %c0_i32, %c0_i32_0 : i32, i32
  }
  func.func @transform_6(%arg0: i32) -> (i32, i32, i32) {
    %c0_i32 = arith.constant 0 : i32
    %c0_i32_0 = arith.constant 0 : i32
    %c0_i32_1 = arith.constant 0 : i32
    return %c0_i32, %arg0, %c0_i32_0 : i32, i32, i32
  }
}

</mosaic_0001>

<bundles_post_ra>
// kernel: tpu_custom_call.1
= control target key start
LH: loop header
LB: loop body
LE: loop exit
PB: predicated region body
PF: predicated region fallthrough
CT: control target
= control target key end

     0   :  { %11 = vsyncpa [#allocation3], 0  ;;  %s2954_s0 = inlined_call_operand.hbm [shape: bf16[256,128], index: 0, kind: input, shape index: {}]   ;;  %s2955_s1 = inlined_call_operand.hbm [shape: bf16[128,128], index: 1, kind: input, shape index: {}]   ;;  %s2956_s2 = inlined_call_operand.vmem [shape: f32[1,128], index: 2, kind: input, shape index: {}]   ;;  %s2957_s3 = inlined_call_operand.vmem [shape: f32[4,128], index: 3, kind: input, shape index: {}]   ;;  %s2958_s4 = inlined_call_operand.hbm [shape: bf16[128,128], index: 4, kind: input, shape index: {}]   ;;  %s2959_s5 = inlined_call_operand.vmem [shape: f32[1,128], index: 5, kind: input, shape index: {}]   ;;  %s2960_s6 = inlined_call_operand.hbm [shape: bf16[4,256,128], index: 6, kind: output, shape index: {}]  }
   0x1   :  { %13 = vsyncpa [#allocation3 + $0x1], 0 }
   0x2   :  { %14 = vsyncpa [#allocation6], 0 }
   0x3   :  { %15 = vsyncpa [#allocation4], 0 }
   0x4   :  { %17 = vsyncpa [#allocation4 + $0x1], 0  ;;  %s2390_s21 = smov 0   ;;  %s2392_s22 = smov 0  }
   0x5   :  { %s2394_s23 = smov 0   ;;  %s2396_s24 = smov 0  }
   0x6 LB: > { %s2411_s25 = sadd.s32 4294967295, %s2340_s24   ;;  %s1555_s26 = sadd.s32 4294967294, %s2340_s24   ;;  %s2340_s24 = sphi %s2396_s24, %s2980_s24   ;;  %s2336_s23 = sphi %s2394_s23, %s2979_s23   ;;  %s2332_s22 = sphi %s2392_s22, %s2978_s22   ;;  %s2328_s21 = sphi %s2390_s21, %s2977_s21  }
   0x7   : > { %p43_p0 = scmp.ne.s32.totalorder %s2332_s22, %s2328_s21  ;;  %p2961_p1 = scmp.eq.s32.totalorder %s2411_s25, 0 }
   0x8   : > { %p178_p3 = scmp.eq.s32.totalorder %s1555_s26, 1  ;;  %p1556_p5 = scmp.ge.s32.totalorder %s2340_s24, 1 }
   0x9   : > { %p2420_p4 = por %p2961_p1, %p43_p0  ;;  %p185_p7 = scmp.lt.s32.totalorder %s2340_s24, 3 }
   0xa   : > { %p2425_p6 = por %p178_p3, %p43_p0  ;;  %s2342_s30 = smov [#allocation5]  }
   0xb   : > { %s2964_s27 = scalar_select %p2420_p4, 1, 0 }
   0xc   : > { %s2965_s28 = scalar_select %p2425_p6, 1, 0 }
   0xd   : > { %p2430_p8 = pnand %p1556_p5, %p185_p7  ;;  %s197_s7 = sshll.u32 %s2342_s30, 4  ;;  %s2434_s7 = int_to_ptr.vmem [resolvable:$true] %s197_s7 }
   0xe   : > { %s2343_s9 = smov [#allocation7]   ;;  %s2212_s13 = scalar_lea.hbm %s2955_s1, 1024 }
   0xf   : > { %p2123_p9 = pneg %p2430_p8  ;;  %s216_s10 = sshll.u32 %s2343_s9, 4  ;;  %s2445_s10 = int_to_ptr.vmem [resolvable:$true] %s216_s10 }
  0x10   : > { %p2213_p12 = scmp.ne.s32.totalorder %s2955_s1, %s2212_s13  ;;  %p2219_p5 = scmp.lt.u32.totalorder %s2212_s13, %s2955_s1 }
  0x11   : > { %p2441_p11 = pnand %p2123_p9, %p2961_p1 }
  0x13   : > { %p2214_p13 = pneg %p2441_p11 }
  0x15   : > { %p2215_p0 = pnand %p2214_p13, %p2213_p12 }
  0x17   : > { %p2216_p3 = pneg %p2215_p0 }
  0x19   : > { %p2221_p7 = pnand %p2219_p5, %p2216_p3 }
  0x1b   : > { %2224 = shalt.err (!%p2221_p7)
}
  0x1c   : > { %s2225_s18 = scalar_lea.vmem %s2434_s7, 1024  ;;  %p2233_p2 = scmp.lt.s32.totalorder %s2434_s7, %s2434_s7 }
  0x1d   : > { %p2226_p9 = scmp.ne.s32.totalorder %s2434_s7, %s2225_s18  ;;  %p2234_p12 = scmp.lt.s32.totalorder %s2225_s18, %s2225_s18 }
  0x1f   : > { %p2228_p10 = pnand %p2226_p9, %p2214_p13  ;;  %p2235_p0 = por %p2234_p12, %p2233_p2 }
  0x21   : > { %p2229_p1 = pneg %p2228_p10 }
  0x23   : > { %p2236_p6 = pnand %p2235_p0, %p2229_p1 }
  0x25   : > { %2239 = shalt.err (!%p2236_p6)
}
  0x26   : > { %s2344_s19 = smov 64   ;;  %s2345_s20 = smov 4  }
  0x27   : > { %2126 = dma.hbm_to_vmem [thread:$0]  (!%p2441_p11), %s2955_s1, 1024, %s2434_s7, [#allocation6], %s2344_s19, %s2344_s19, %s2345_s20  }
  0x28   : > { %s2240_s12 = scalar_lea.hbm %s2958_s4, 1024 }
  0x29   : > { %p2241_p1 = scmp.ne.s32.totalorder %s2958_s4, %s2240_s12  ;;  %p2247_p10 = scmp.lt.u32.totalorder %s2240_s12, %s2958_s4 }
  0x2b   : > { %p2243_p2 = pnand %p2241_p1, %p2214_p13 }
  0x2d   : > { %p2244_p6 = pneg %p2243_p2 }
  0x2f   : > { %p2249_p3 = pnand %p2247_p10, %p2244_p6 }
  0x31   : > { %2252 = shalt.err (!%p2249_p3)
}
  0x32   : > { %s2253_s7 = scalar_lea.vmem %s2445_s10, 1024  ;;  %p2261_p12 = scmp.lt.s32.totalorder %s2445_s10, %s2445_s10 }
  0x33   : > { %p2254_p5 = scmp.ne.s32.totalorder %s2445_s10, %s2253_s7  ;;  %p2262_p0 = scmp.lt.s32.totalorder %s2253_s7, %s2253_s7 }
  0x35   : > { %p2256_p7 = pnand %p2254_p5, %p2214_p13  ;;  %p2263_p1 = por %p2262_p0, %p2261_p12 }
  0x37   : > { %p2257_p9 = pneg %p2256_p7 }
  0x39   : > { %p2264_p2 = pnand %p2263_p1, %p2257_p9 }
  0x3b   : > { %2267 = shalt.err (!%p2264_p2)
}
  0x3c   : > { %2129 = dma.hbm_to_vmem [thread:$0]  (!%p2441_p11), %s2958_s4, 1024, %s2445_s10, [#allocation6], %s2344_s19, %s2344_s19, %s2345_s20  }
  0x3d   : > { %s2506_s8 = sadd.s32 1, %s2340_s24   ;;  %s30_s26 = sadd.s32 1, %s2336_s23 }
  0x3e   : > { %s27_s30 = ssub.s32 %s2340_s24, %s2506_s8  ;;  %p37_p13 = scmp.ne.s32.totalorder %s2336_s23, %s2332_s22 }
  0x3f   : > { %p28_p6 = scmp.eq.s32.totalorder %s27_s30, 0  ;;  %p38_p10 = scmp.eq.s32.totalorder %s2340_s24, 0 }
  0x40   : > { %p2968_p3 = scmp.eq.s32.totalorder %s2411_s25, 1  ;;  %p2140_p7 = scmp.lt.s32.totalorder %s2340_s24, 2 }
  0x41   : > { %s2522_s11 = scalar_select %p28_p6, %s2336_s23, %s30_s26  }
  0x42   : > { %p2516_p5 = por %p2968_p3, %p37_p13  ;;  %p39_p9 = por %p38_p10, %p37_p13 }
  0x43   : > { %s233_s12 = sand.u32 1, %s2336_s23   ;;  %s1664_s10 = sshll.u32 %s2340_s24, 10 }
  0x44   : > { %s2969_s9 = scalar_select %p2516_p5, 1, 0 }
  0x45   : > { %s1560_s13 = sshll.u32 %s233_s12, 6  ;;  %s2529_s16 = scalar_lea.hbm %s2954_s0, %s1664_s10 }
  0x46   : > { %s237_s7 = scalar_lea.vmem [#allocation2], %s1560_s13  ;;  %p2533_p11 = pnand %p2140_p7, %p39_p9 }
  0x47   : > { %s244_s17 = sshll.u32 %s237_s7, 4  ;;  %s2537_s26 = scalar_lea.sflag [#allocation3], %s233_s12  ;;  %s2531_s17 = int_to_ptr.vmem [resolvable:$true] %s244_s17 }
  0x48   : > { %s2268_s30 = scalar_lea.hbm %s2529_s16, 1024  ;;  %p2270_p0 = pneg %p2533_p11 }
  0x49   : > { %p2269_p12 = scmp.ne.s32.totalorder %s2529_s16, %s2268_s30  ;;  %s2273_s14 = scalar_lea.hbm %s2954_s0, 2048 }
  0x4a   : > { %p2274_p13 = scmp.lt.u32.totalorder %s2529_s16, %s2954_s0  ;;  %p2275_p6 = scmp.lt.u32.totalorder %s2273_s14, %s2268_s30 }
  0x4b   : > { %p2271_p1 = pnand %p2270_p0, %p2269_p12  ;;  %p2277_p3 = scmp.lt.u32.totalorder %s2268_s30, %s2529_s16 }
  0x4c   : > { %p2276_p10 = por %p2275_p6, %p2274_p13 }
  0x4d   : > { %p2272_p2 = pneg %p2271_p1 }
  0x4e   : > { %p2278_p7 = por %p2277_p3, %p2276_p10 }
  0x50   : > { %p2279_p9 = pnand %p2278_p7, %p2272_p2 }
  0x52   : > { %2282 = shalt.err (!%p2279_p9)
}
  0x53   : > { %s2283_s12 = scalar_lea.vmem %s2531_s17, 1024  ;;  %s2346_s13 = smov [#allocation2]  }
  0x54   : > { %p2284_p12 = scmp.ne.s32.totalorder %s2531_s17, %s2283_s12  ;;  %s2288_s10 = sshll.u32 %s2346_s13, 4  ;;  %s2289_s10 = int_to_ptr.vmem [resolvable:$false] %s2288_s10 }
  0x55   : > { %s2290_s15 = scalar_lea.vmem %s2289_s10, 2048  ;;  %p2291_p4 = scmp.lt.s32.totalorder %s2531_s17, %s2289_s10 }
  0x56   : > { %p2286_p1 = pnand %p2284_p12, %p2270_p0  ;;  %p2292_p13 = scmp.lt.s32.totalorder %s2290_s15, %s2283_s12 }
  0x58   : > { %p2287_p5 = pneg %p2286_p1  ;;  %p2293_p6 = por %p2292_p13, %p2291_p4 }
  0x5a   : > { %p2294_p10 = pnand %p2293_p6, %p2287_p5 }
  0x5c   : > { %2297 = shalt.err (!%p2294_p10)
}
  0x5d   : > { %2133 = dma.hbm_to_vmem [thread:$0]  (!%p2533_p11), %s2529_s16, 1024, %s2531_s17, %s2537_s26, %s2344_s19, %s2344_s19, %s2345_s20  }
  0x5e   : > { %256 = sbr.rel (%p2430_p8) target bundleno = 681 (0x2a9), region = 44  ;;  %s2571_s30 = sand.u32 (!%p2430_p8), 1, %s2332_s22  }
  0x5f   : > { %s1564_s14 = sshll.u32 (!%p2430_p8), %s2571_s30, 6  ;;  %s259_s7 = scalar_lea.sflag (!%p2430_p8), [#allocation3], %s2571_s30 }
  0x60   : > { %s2575_s12 = scalar_lea.vmem (!%p2430_p8), [#allocation2], %s1564_s14  ;;  %p2971_p4 = scmp.ne.s32.totalorder (!%p2430_p8), %s2964_s27, 0 }
  0x65   : > { %2315 = dma.done.wait (%p2971_p4), %s259_s7, 1024  }
  0x66   : > { %2317 = vsyncadd (%p2971_p4), %s259_s7, 4294966272  ;;  %p2972_p5 = scmp.eq.s32.totalorder %s2411_s25, 0 }
  0x68   : > { %2319 = dma.done.wait (%p2972_p5), [#allocation6], 2048   ;;  %p2973_p8 = pmov %p2972_p5 }
  0x69   : > { %v2188_v0 = vld [vmem:[#allocation5] sm:$0xff]   ;;  %v2189_v1 = vld [vmem:[#allocation5 + $0x8] sm:$0xff]   ;;  %v2190_v2 = vld [vmem:[#allocation5 + $0x10] sm:$0xff]   ;;  %v2347_v24 = vmov 1966171168   ;;  %v547_v26 = vlaneseq  ;;  %s1567_s18 = sshll.u32 %s2571_s30, 8 }
  0x6a   : > { %2321 = vsyncadd (%p2973_p8), [#allocation6], 4294965248  ;;  %1977 = vmatprep.subr.bf16.mxu0 %v2188_v0  ;;  %v2191_v3 = vld [vmem:[#allocation5 + $0x18] sm:$0xff]   ;;  %v2196_v4 = vld [vmem:[%s2575_s12] sm:$0xff]   ;;  %v545_v25 = vunpack.c.l.s4 %v2347_v24  ;;  %s2822_s26 = scalar_lea.vmem [#allocation8], %s1567_s18  ;;  %s1421_s13 = scalar_lea.sflag [#allocation4], %s2571_s30 }
  0x6b   : > { %1978 = vmatpush3.bf16.msra.mxu0 %v2188_v0  ;;  %1993 = vmatprep.mubr.bf16.mxu0 %v2196_v4  ;;  %v2192_v5 = vld [vmem:[#allocation5 + $0x20] sm:$0xff]   ;;  %v2193_v6 = vld [vmem:[#allocation5 + $0x28] sm:$0xff]   ;;  %v2194_v9 = vld [vmem:[#allocation5 + $0x30] sm:$0xff]   ;;  %v548_v28 = vshrl.u32 %v547_v26, 7 }
  0x6c   : > { %1979 = vmatprep.subr.bf16.mxu0 %v2189_v1  ;;  %v2204_v7 = vld [vmem:[#allocation7] sm:$0xff]   ;;  %v2205_v8 = vld [vmem:[#allocation7 + $0x8] sm:$0xff]   ;;  %v2206_v10 = vld [vmem:[#allocation7 + $0x10] sm:$0xff]   ;;  %v546_v27 = vunpack.c.0.s8 %v545_v25 }
  0x6d   : > { %2089 = vmatprep.subr.bf16.mxu1 %v2204_v7  ;;  %v2195_v11 = vld [vmem:[#allocation5 + $0x38] sm:$0xff]   ;;  %v2197_v13 = vld [vmem:[%s2575_s12 + $0x8] sm:$0xff]   ;;  %v2208_v14 = vld [vmem:[#allocation7 + $0x20] sm:$0xff]   ;;  %v562_v34 = vsub.s32 0, %v548_v28 }
  0x6e   : > { %2097 = vmatpush3.bf16.msra.mxu1 %v2204_v7  ;;  %v2207_v12 = vld [vmem:[#allocation7 + $0x18] sm:$0xff]   ;;  %v2198_v15 = vld [vmem:[%s2575_s12 + $0x10] sm:$0xff]   ;;  %v2200_v17 = vld [vmem:[%s2575_s12 + $0x20] sm:$0xff]   ;;  %v549_v30 = vsub.s32 %v546_v27, %v548_v28 }
  0x6f   : > { %1980 = vmatpush3.bf16.msra.mxu0 %v2189_v1  ;;  %2090 = vmatprep.subr.bf16.mxu1 %v2205_v8  ;;  %v2199_v16 = vld [vmem:[%s2575_s12 + $0x18] sm:$0xff]   ;;  %v2201_v18 = vld [vmem:[%s2575_s12 + $0x28] sm:$0xff]   ;;  %v2202_v19 = vld [vmem:[%s2575_s12 + $0x30] sm:$0xff]  }
  0x70   : > { %1981 = vmatprep.subr.bf16.mxu0 %v2190_v2  ;;  %v2203_v20 = vld [vmem:[%s2575_s12 + $0x38] sm:$0xff]   ;;  %v2209_v21 = vld [vmem:[#allocation7 + $0x28] sm:$0xff]   ;;  %v2210_v22 = vld [vmem:[#allocation7 + $0x30] sm:$0xff]  }
  0x71   : > { %v2211_v23 = vld [vmem:[#allocation7 + $0x38] sm:$0xff]   ;;  %v1585_v29 = vld.sshfl [vmem:[%s2957_s3] sm:$0x33 pattern:$0x75316420] }
  0x72   : > { %2098 = vmatpush3.bf16.msra.mxu1 %v2205_v8  ;;  %v543_v31 = vcombine.high %v1585_v29, %v1585_v29  ;;  %v550_v32 = vrot.slane %v1585_v29, %v549_v30  ;;  %v2599_v36 = vld [vmem:[%s2956_s2] ss:$0 sm:$0xff] }
  0x73   : > { %1982 = vmatpush3.bf16.msra.mxu0 %v2190_v2  ;;  %2091 = vmatprep.subr.bf16.mxu1 %v2206_v10 }
  0x74   : > { %1983 = vmatprep.subr.bf16.mxu0 %v2191_v3  ;;  %v557_v33 = vrot.slane %v543_v31, %v549_v30  ;;  %v558_v35 = vcombine.high %v550_v32, %v550_v32  ;;  %v2601_v38 = vrot.slane %v550_v32, %v562_v34 }
  0x76   : > { %2099 = vmatpush3.bf16.msra.mxu1 %v2206_v10  ;;  %v559_v37 = vcombine.high %v557_v33, %v557_v33  ;;  %v2603_v39 = vrot.slane %v557_v33, %v562_v34  ;;  %v2605_v40 = vrot.slane %v558_v35, %v562_v34 }
  0x77   : > { %1984 = vmatpush3.bf16.msra.mxu0 %v2191_v3  ;;  %2092 = vmatprep.subr.bf16.mxu1 %v2207_v12 }
  0x78   : > { %1985 = vmatprep.subr.bf16.mxu0 %v2192_v5  ;;  %v2613_v46 = vrot.slane %v559_v37, %v562_v34 }
  0x7a   : > { %2100 = vmatpush3.bf16.msra.mxu1 %v2207_v12 }
  0x7b   : > { %1986 = vmatpush3.bf16.msra.mxu0 %v2192_v5  ;;  %2093 = vmatprep.subr.bf16.mxu1 %v2208_v14 }
  0x7c   : > { %1987 = vmatprep.subr.bf16.mxu0 %v2193_v6 }
  0x7e   : > { %2101 = vmatpush3.bf16.msra.mxu1 %v2208_v14 }
  0x7f   : > { %1988 = vmatpush3.bf16.msra.mxu0 %v2193_v6  ;;  %2094 = vmatprep.subr.bf16.mxu1 %v2209_v21 }
  0x80   : > { %1989 = vmatprep.subr.bf16.mxu0 %v2194_v9 }
  0x82   : > { %2102 = vmatpush3.bf16.msra.mxu1 %v2209_v21 }
  0x83   : > { %1990 = vmatpush3.bf16.msra.mxu0 %v2194_v9  ;;  %2095 = vmatprep.subr.bf16.mxu1 %v2210_v22 }
  0x84   : > { %1991 = vmatprep.subr.bf16.mxu0 %v2195_v11 }
  0x86   : > { %2103 = vmatpush3.bf16.msra.mxu1 %v2210_v22 }
  0x87   : > { %1992 = vmatpush3.bf16.msra.mxu0 %v2195_v11  ;;  %2096 = vmatprep.subr.bf16.mxu1 %v2211_v23 }
  0x88   : > { %2009 = vmatprep.subr.bf16.mxu0 %v2204_v7 }
  0x8a   : > { %1994 = vmatmul.mubr.bf16.vlgmr.msra.gmra.mrb[0].mxu0 %v2197_v13  ;;  %2104 = vmatpush3.bf16.msra.mxu1 %v2211_v23 }
  0x8b   : > { %1997 = vmatprep.mubr.bf16.mxu0 %v2198_v15  ;;  %2010 = vmatpush3.bf16.msra.mxu0 %v2204_v7 }
  0x8c   : > { %2011 = vmatprep.subr.bf16.mxu0 %v2205_v8 }
  0x8f   : > { %2012 = vmatpush3.bf16.msra.mxu0 %v2205_v8 }
  0x90   : > { %2013 = vmatprep.subr.bf16.mxu0 %v2206_v10 }
  0x92   : > { %1998 = vmatmul.mubr.bf16.gmra.mrb[4].mxu0 %v2199_v16 }
  0x93   : > { %2001 = vmatprep.mubr.bf16.mxu0 %v2200_v17  ;;  %2014 = vmatpush3.bf16.msra.mxu0 %v2206_v10 }
  0x94   : > { %2015 = vmatprep.subr.bf16.mxu0 %v2207_v12 }
  0x97   : > { %2016 = vmatpush3.bf16.msra.mxu0 %v2207_v12 }
  0x98   : > { %2017 = vmatprep.subr.bf16.mxu0 %v2208_v14 }
  0x9a   : > { %2002 = vmatmul.mubr.bf16.gmra.mrb[8].mxu0 %v2201_v18 }
  0x9b   : > { %2005 = vmatprep.mubr.bf16.mxu0 %v2202_v19  ;;  %2018 = vmatpush3.bf16.msra.mxu0 %v2208_v14 }
  0x9c   : > { %2019 = vmatprep.subr.bf16.mxu0 %v2209_v21 }
  0x9f   : > { %2020 = vmatpush3.bf16.msra.mxu0 %v2209_v21 }
  0xa0   : > { %2021 = vmatprep.subr.bf16.mxu0 %v2210_v22 }
  0xa2   : > { %2006 = vmatmul.mubr.bf16.gmra.mrb[12].mxu0 %v2203_v20 }
  0xa3   : > { %2022 = vmatpush3.bf16.msra.mxu0 %v2210_v22 }
  0xa4   : > { %2023 = vmatprep.subr.bf16.mxu0 %v2211_v23 }
  0xa7   : > { %2024 = vmatpush3.bf16.msra.mxu0 %v2211_v23 }
 0x15d   : > { %v1995_v41 = vpop.f32.mrb[0].mxu0 }
 0x15e   : > { %v2608_v42 = vadd.f32 %v1995_v41, %v2599_v36  ;;  %v471_v43 = vpop.f32.mrb[1].mxu0 }
 0x15f   : > { %v2611_v44 = vadd.f32 %v2599_v36, %v471_v43  ;;  %v1996_v45 = vpop.f32.mrb[2].mxu0 }
 0x160   : > { %v582_v47 = vmul.f32 %v2601_v38, %v2608_v42  ;;  %v2618_v48 = vadd.f32 %v1996_v45, %v2599_v36  ;;  %v474_v49 = vpop.f32.mrb[3].mxu0  ;;  %v598_v50 = vmul.f32 %v2603_v39, %v2608_v42  ;;  %v614_v51 = vmul.f32 %v2605_v40, %v2608_v42 }
 0x161   : > { %v2625_v52 = vadd.f32 %v2599_v36, %v474_v49  ;;  %v580_v53 = vmul.f32 %v2601_v38, %v2611_v44  ;;  %v596_v54 = vmul.f32 %v2603_v39, %v2611_v44  ;;  %v612_v55 = vmul.f32 %v2605_v40, %v2611_v44 }
 0x162   : > { %v646_v56 = vmax.f32 %v582_v47, 0.0  ;;  %v583_v57 = vmul.f32 %v2601_v38, %v2618_v48  ;;  %v599_v58 = vmul.f32 %v2603_v39, %v2618_v48  ;;  %v662_v59 = vmax.f32 %v598_v50, 0.0 }
 0x163   : > { %v581_v60 = vmul.f32 %v2601_v38, %v2625_v52  ;;  %v644_v61 = vmax.f32 %v580_v53, 0.0  ;;  %v597_v62 = vmul.f32 %v2603_v39, %v2625_v52  ;;  %v660_v63 = vmax.f32 %v596_v54, 0.0 }
 0x164   : > { %v647_v0 = vmax.f32 %v583_v57, 0.0  ;;  %v613_v1 = vmul.f32 %v2605_v40, %v2625_v52  ;;  %v676_v2 = vmax.f32 %v612_v55, 0.0  ;;  %v663_v3 = vmax.f32 %v599_v58, 0.0 }
 0x165   : > { %v1999_v4 = vpop.f32.mrb[4].mxu0  ;;  %v645_v5 = vmax.f32 %v581_v60, 0.0  ;;  %v661_v6 = vmax.f32 %v597_v62, 0.0  ;;  %v615_v7 = vmul.f32 %v2605_v40, %v2618_v48  ;;  %v678_v8 = vmax.f32 %v614_v51, 0.0 }
 0x166   : > { %v709_v9 = vpack.c.bf16 %v647_v0, %v646_v56  ;;  %v2646_v10 = vadd.f32 %v1999_v4, %v2599_v36  ;;  %v487_v11 = vpop.f32.mrb[5].mxu0  ;;  %v677_v12 = vmax.f32 %v613_v1, 0.0  ;;  %v2648_v13 = vpack.c.bf16 %v663_v3, %v662_v59 }
 0x167   : > { %v2651_v14 = vadd.f32 %v2599_v36, %v487_v11  ;;  %v2000_v15 = vpop.f32.mrb[6].mxu0  ;;  %v708_v16 = vpack.c.bf16 %v645_v5, %v644_v61  ;;  %v2653_v17 = vpack.c.bf16 %v661_v6, %v660_v63  ;;  %v679_v18 = vmax.f32 %v615_v7, 0.0 }
 0x168   : > { %v2656_v19 = vadd.f32 %v2000_v15, %v2599_v36  ;;  %v490_v20 = vpop.f32.mrb[7].mxu0  ;;  %v586_v21 = vmul.f32 %v2601_v38, %v2646_v10  ;;  %v2660_v22 = vpack.c.bf16 %v677_v12, %v676_v2  ;;  %v602_v23 = vmul.f32 %v2603_v39, %v2646_v10 }
 0x169   : > { %v2665_v24 = vadd.f32 %v2599_v36, %v490_v20  ;;  %2025 = vmatprep.mubr.bf16.mxu0 %v708_v16  ;;  %v584_v25 = vmul.f32 %v2601_v38, %v2651_v14  ;;  %v2669_v26 = vpack.c.bf16 %v679_v18, %v678_v8  ;;  %v600_v27 = vmul.f32 %v2603_v39, %v2651_v14 }
 0x16a   : > { %2026 = vmatmul.mubr.bf16.vlgmr.msra.gmra.mrb[16].mxu0 %v709_v9  ;;  %v587_v28 = vmul.f32 %v2601_v38, %v2656_v19  ;;  %v650_v29 = vmax.f32 %v586_v21, 0.0  ;;  %v616_v30 = vmul.f32 %v2605_v40, %v2651_v14  ;;  %v603_v31 = vmul.f32 %v2603_v39, %v2656_v19 }
 0x16b   : > { %v585_v32 = vmul.f32 %v2601_v38, %v2665_v24  ;;  %v648_v33 = vmax.f32 %v584_v25, 0.0  ;;  %v601_v34 = vmul.f32 %v2603_v39, %v2665_v24  ;;  %v664_v35 = vmax.f32 %v600_v27, 0.0 }
 0x16c   : > { %v651_v37 = vmax.f32 %v587_v28, 0.0  ;;  %v617_v41 = vmul.f32 %v2605_v40, %v2665_v24  ;;  %v680_v43 = vmax.f32 %v616_v30, 0.0  ;;  %v666_v45 = vmax.f32 %v602_v23, 0.0 }
 0x16d   : > { %v2003_v47 = vpop.f32.mrb[8].mxu0  ;;  %v649_v49 = vmax.f32 %v585_v32, 0.0  ;;  %v665_v50 = vmax.f32 %v601_v34, 0.0  ;;  %v667_v51 = vmax.f32 %v603_v31, 0.0  ;;  %v618_v53 = vmul.f32 %v2605_v40, %v2646_v10 }
 0x16e   : > { %v2688_v54 = vadd.f32 %v2003_v47, %v2599_v36  ;;  %v503_v55 = vpop.f32.mrb[9].mxu0  ;;  %v711_v56 = vpack.c.bf16 %v651_v37, %v650_v29  ;;  %v681_v57 = vmax.f32 %v617_v41, 0.0  ;;  %v619_v58 = vmul.f32 %v2605_v40, %v2656_v19 }
 0x16f   : > { %v2693_v59 = vadd.f32 %v2599_v36, %v503_v55  ;;  %v2004_v60 = vpop.f32.mrb[10].mxu0  ;;  %v710_v61 = vpack.c.bf16 %v649_v49, %v648_v33  ;;  %v2695_v62 = vpack.c.bf16 %v665_v50, %v664_v35  ;;  %v2697_v63 = vpack.c.bf16 %v667_v51, %v666_v45 }
 0x170   : > { %v2700_v0 = vadd.f32 %v2004_v60, %v2599_v36  ;;  %v506_v1 = vpop.f32.mrb[11].mxu0  ;;  %v590_v2 = vmul.f32 %v2601_v38, %v2688_v54  ;;  %v606_v3 = vmul.f32 %v2603_v39, %v2688_v54  ;;  %v2706_v4 = vpack.c.bf16 %v681_v57, %v680_v43 }
 0x171   : > { %v2709_v5 = vadd.f32 %v2599_v36, %v506_v1  ;;  %2029 = vmatprep.mubr.bf16.mxu0 %v710_v61  ;;  %v588_v6 = vmul.f32 %v2601_v38, %v2693_v59  ;;  %v604_v7 = vmul.f32 %v2603_v39, %v2693_v59  ;;  %v682_v8 = vmax.f32 %v618_v53, 0.0 }
 0x172   : > { %2030 = vmatmul.mubr.bf16.gmra.mrb[20].mxu0 %v711_v56  ;;  %v591_v9 = vmul.f32 %v2601_v38, %v2700_v0  ;;  %v654_v11 = vmax.f32 %v590_v2, 0.0  ;;  %v607_v12 = vmul.f32 %v2603_v39, %v2700_v0  ;;  %v670_v15 = vmax.f32 %v606_v3, 0.0 }
 0x173   : > { %v589_v16 = vmul.f32 %v2601_v38, %v2709_v5  ;;  %v652_v18 = vmax.f32 %v588_v6, 0.0  ;;  %v605_v20 = vmul.f32 %v2603_v39, %v2709_v5  ;;  %v668_v21 = vmax.f32 %v604_v7, 0.0 }
 0x174   : > { %v655_v23 = vmax.f32 %v591_v9, 0.0  ;;  %v671_v25 = vmax.f32 %v607_v12, 0.0  ;;  %v683_v27 = vmax.f32 %v619_v58, 0.0  ;;  %v620_v28 = vmul.f32 %v2605_v40, %v2693_v59 }
 0x175   : > { %v2007_v29 = vpop.f32.mrb[12].mxu0  ;;  %v653_v30 = vmax.f32 %v589_v16, 0.0  ;;  %v669_v31 = vmax.f32 %v605_v20, 0.0  ;;  %v621_v32 = vmul.f32 %v2605_v40, %v2709_v5  ;;  %v622_v33 = vmul.f32 %v2605_v40, %v2688_v54 }
 0x176   : > { %v2730_v34 = vadd.f32 %v2007_v29, %v2599_v36  ;;  %v519_v35 = vpop.f32.mrb[13].mxu0  ;;  %v713_v37 = vpack.c.bf16 %v655_v23, %v654_v11  ;;  %v721_v41 = vpack.c.bf16 %v671_v25, %v670_v15  ;;  %v2732_v43 = vpack.c.bf16 %v683_v27, %v682_v8 }
 0x177   : > { %v2735_v45 = vadd.f32 %v2599_v36, %v519_v35  ;;  %v2008_v47 = vpop.f32.mrb[14].mxu0  ;;  %v712_v49 = vpack.c.bf16 %v653_v30, %v652_v18  ;;  %v720_v50 = vpack.c.bf16 %v669_v31, %v668_v21  ;;  %v684_v51 = vmax.f32 %v620_v28, 0.0 }
 0x178   : > { %v2738_v53 = vadd.f32 %v2008_v47, %v2599_v36  ;;  %v522_v55 = vpop.f32.mrb[15].mxu0  ;;  %v594_v56 = vmul.f32 %v2601_v38, %v2730_v34  ;;  %v610_v57 = vmul.f32 %v2603_v39, %v2730_v34  ;;  %v685_v58 = vmax.f32 %v621_v32, 0.0 }
 0x179   : > { %v2745_v60 = vadd.f32 %v2599_v36, %v522_v55  ;;  %2033 = vmatprep.mubr.bf16.mxu0 %v712_v49  ;;  %2049 = vmatprep.mubr.bf16.mxu1 %v720_v50  ;;  %v592_v61 = vmul.f32 %v2601_v38, %v2735_v45  ;;  %v608_v1 = vmul.f32 %v2603_v39, %v2735_v45  ;;  %v686_v2 = vmax.f32 %v622_v33, 0.0 }
 0x17a   : > { %2034 = vmatmul.mubr.bf16.gmra.mrb[24].mxu0 %v713_v37  ;;  %2050 = vmatmul.mubr.bf16.vlgmr.msra.gmra.mrb[0].mxu1 %v721_v41  ;;  %v595_v3 = vmul.f32 %v2601_v38, %v2738_v53  ;;  %v658_v6 = vmax.f32 %v594_v56, 0.0  ;;  %v611_v7 = vmul.f32 %v2603_v39, %v2738_v53  ;;  %v674_v36 = vmax.f32 %v610_v57, 0.0 }
 0x17b   : > { %v593_v8 = vmul.f32 %v2601_v38, %v2745_v60  ;;  %v656_v9 = vmax.f32 %v592_v61, 0.0  ;;  %v609_v11 = vmul.f32 %v2603_v39, %v2745_v60  ;;  %v672_v12 = vmax.f32 %v608_v1, 0.0 }
 0x17c   : > { %v659_v15 = vmax.f32 %v595_v3, 0.0  ;;  %v675_v16 = vmax.f32 %v611_v7, 0.0  ;;  %v2759_v18 = vpack.c.bf16 %v685_v58, %v684_v51  ;;  %v623_v20 = vmul.f32 %v2605_v40, %v2700_v0 }
 0x17d   : > { %v657_v21 = vmax.f32 %v593_v8, 0.0  ;;  %v673_v23 = vmax.f32 %v609_v11, 0.0  ;;  %v624_v25 = vmul.f32 %v2605_v40, %v2735_v45  ;;  %v625_v38 = vmul.f32 %v2605_v40, %v2745_v60 }
 0x17e   : > { %v715_v27 = vpack.c.bf16 %v659_v15, %v658_v6  ;;  %v723_v28 = vpack.c.bf16 %v675_v16, %v674_v36  ;;  %v687_v29 = vmax.f32 %v623_v20, 0.0  ;;  %v626_v39 = vmul.f32 %v2605_v40, %v2730_v34 }
 0x17f   : > { %v714_v30 = vpack.c.bf16 %v657_v21, %v656_v9  ;;  %v722_v31 = vpack.c.bf16 %v673_v23, %v672_v12  ;;  %v688_v32 = vmax.f32 %v624_v25, 0.0  ;;  %v689_v33 = vmax.f32 %v625_v38, 0.0 }
 0x180   : > { %v729_v35 = vpack.c.bf16 %v687_v29, %v686_v2  ;;  %v627_v37 = vmul.f32 %v2605_v40, %v2738_v53  ;;  %v628_v41 = vmul.f32 %v2613_v46, %v2611_v44  ;;  %v690_v49 = vmax.f32 %v626_v39, 0.0 }
 0x181   : > { %2037 = vmatprep.mubr.bf16.mxu0 %v714_v30  ;;  %2053 = vmatprep.mubr.bf16.mxu1 %v722_v31  ;;  %v730_v47 = vpack.c.bf16 %v689_v33, %v688_v32  ;;  %v629_v50 = vmul.f32 %v2613_v46, %v2625_v52  ;;  %v630_v51 = vmul.f32 %v2613_v46, %v2608_v42 }
 0x182   : > { %2038 = vmatmul.mubr.bf16.gmra.mrb[28].mxu0 %v715_v27  ;;  %2054 = vmatmul.mubr.bf16.gmra.mrb[4].mxu1 %v723_v28  ;;  %v691_v55 = vmax.f32 %v627_v37, 0.0  ;;  %v692_v56 = vmax.f32 %v628_v41, 0.0  ;;  %v631_v40 = vmul.f32 %v2613_v46, %v2618_v48  ;;  %v632_v44 = vmul.f32 %v2613_v46, %v2651_v14 }
 0x183   : > { %2041 = vmatprep.mubr.bf16.mxu0 %v2653_v17  ;;  %2057 = vmatprep.mubr.bf16.mxu1 %v2660_v22  ;;  %v693_v57 = vmax.f32 %v629_v50, 0.0  ;;  %v694_v58 = vmax.f32 %v630_v51, 0.0  ;;  %v633_v52 = vmul.f32 %v2613_v46, %v2665_v24  ;;  %v634_v42 = vmul.f32 %v2613_v46, %v2646_v10 }
 0x184   : > { %v731_v61 = vpack.c.bf16 %v691_v55, %v690_v49  ;;  %v695_v1 = vmax.f32 %v631_v40, 0.0  ;;  %v696_v2 = vmax.f32 %v632_v44, 0.0  ;;  %v635_v48 = vmul.f32 %v2613_v46, %v2656_v19 }
 0x185   : > { %v732_v3 = vpack.c.bf16 %v693_v57, %v692_v56  ;;  %v697_v14 = vmax.f32 %v633_v52, 0.0  ;;  %v698_v6 = vmax.f32 %v634_v42, 0.0  ;;  %v636_v17 = vmul.f32 %v2613_v46, %v2693_v59 }
 0x186   : > { %v733_v22 = vpack.c.bf16 %v695_v1, %v694_v58  ;;  %v699_v7 = vmax.f32 %v635_v48, 0.0  ;;  %v637_v24 = vmul.f32 %v2613_v46, %v2709_v5  ;;  %v638_v10 = vmul.f32 %v2613_v46, %v2688_v54 }
 0x187   : > { %v734_v36 = vpack.c.bf16 %v697_v14, %v696_v2  ;;  %v639_v8 = vmul.f32 %v2613_v46, %v2700_v0  ;;  %v640_v19 = vmul.f32 %v2613_v46, %v2735_v45  ;;  %v700_v11 = vmax.f32 %v636_v17, 0.0 }
 0x188   : > { %v735_v9 = vpack.c.bf16 %v699_v7, %v698_v6  ;;  %v701_v12 = vmax.f32 %v637_v24, 0.0  ;;  %v641_v59 = vmul.f32 %v2613_v46, %v2745_v60  ;;  %v702_v15 = vmax.f32 %v638_v10, 0.0 }
 0x189   : > { %v703_v16 = vmax.f32 %v639_v8, 0.0  ;;  %v642_v5 = vmul.f32 %v2613_v46, %v2730_v34  ;;  %v643_v54 = vmul.f32 %v2613_v46, %v2738_v53  ;;  %v704_v45 = vmax.f32 %v640_v19, 0.0 }
 0x18a   : > { %2042 = vmatmul.mubr.bf16.gmra.mrb[32].mxu0 %v2648_v13  ;;  %2058 = vmatmul.mubr.bf16.gmra.mrb[8].mxu1 %v2669_v26  ;;  %v736_v0 = vpack.c.bf16 %v701_v12, %v700_v11  ;;  %v705_v20 = vmax.f32 %v641_v59, 0.0  ;;  %v2815_v13 = vld [vmem:[%s2959_s5] ss:$0 sm:$0xff] }
 0x18b   : > { %2045 = vmatprep.mubr.bf16.mxu0 %v2695_v62  ;;  %2061 = vmatprep.mubr.bf16.mxu1 %v2706_v4  ;;  %v737_v60 = vpack.c.bf16 %v703_v16, %v702_v15  ;;  %v706_v21 = vmax.f32 %v642_v5, 0.0  ;;  %v707_v23 = vmax.f32 %v643_v54, 0.0 }
 0x18c   : > { %v738_v25 = vpack.c.bf16 %v705_v20, %v704_v45 }
 0x18d   : > { %v739_v38 = vpack.c.bf16 %v707_v23, %v706_v21 }
 0x192   : > { %2046 = vmatmul.mubr.bf16.gmra.mrb[36].mxu0 %v2697_v63  ;;  %2062 = vmatmul.mubr.bf16.gmra.mrb[12].mxu1 %v2732_v43 }
 0x193   : > { %2065 = vmatprep.mubr.bf16.mxu1 %v2759_v18 }
 0x19a   : > { %2066 = vmatmul.mubr.bf16.gmra.mrb[16].mxu1 %v729_v35 }
 0x19b   : > { %2069 = vmatprep.mubr.bf16.mxu1 %v730_v47 }
 0x1a2   : > { %2070 = vmatmul.mubr.bf16.gmra.mrb[20].mxu1 %v731_v61 }
 0x1a3   : > { %2073 = vmatprep.mubr.bf16.mxu1 %v732_v3 }
 0x1aa   : > { %2074 = vmatmul.mubr.bf16.gmra.mrb[24].mxu1 %v733_v22 }
 0x1ab   : > { %2077 = vmatprep.mubr.bf16.mxu1 %v734_v36 }
 0x1b2   : > { %2078 = vmatmul.mubr.bf16.gmra.mrb[28].mxu1 %v735_v9 }
 0x1b3   : > { %2081 = vmatprep.mubr.bf16.mxu1 %v736_v0 }
 0x1ba   : > { %2082 = vmatmul.mubr.bf16.gmra.mrb[32].mxu1 %v737_v60 }
 0x1bb   : > { %2085 = vmatprep.mubr.bf16.mxu1 %v738_v25 }
 0x1c2   : > { %2086 = vmatmul.mubr.bf16.gmra.mrb[36].mxu1 %v739_v38 }
 0x23d   : > { %v2027_v46 = vpop.f32.mrb[16].mxu0 }
 0x23e   : > { %v845_v26 = vpop.f32.mrb[17].mxu0  ;;  %v854_v63 = vadd.f32 %v2027_v46, %v2815_v13 }
 0x23f   : > { %v2028_v62 = vpop.f32.mrb[18].mxu0  ;;  %v846_v43 = vadd.f32 %v2815_v13, %v845_v26 }
 0x240   : > { %v857_v4 = vadd.f32 %v2028_v62, %v2815_v13  ;;  %v848_v34 = vpop.f32.mrb[19].mxu0 }
 0x241   : > { %v849_v53 = vadd.f32 %v2815_v13, %v848_v34 }
 0x242   : > { %v1738_v18 = vpack.c.bf16 %v857_v4, %v854_v63 }
 0x243   : > { %v1733_v27 = vpack.c.bf16 %v849_v53, %v846_v43 }
 0x244   : > { %1890 = vst [vmem:[%s2822_s26 + $0x8] sm:$0xff] %v1738_v18  }
 0x245   : > { %1734 = vst [vmem:[%s2822_s26] sm:$0xff] %v1733_v27   ;;  %v2031_v28 = vpop.f32.mrb[20].mxu0 }
 0x246   : > { %v861_v29 = vpop.f32.mrb[21].mxu0  ;;  %v870_v30 = vadd.f32 %v2031_v28, %v2815_v13 }
 0x247   : > { %v2032_v39 = vpop.f32.mrb[22].mxu0  ;;  %v862_v33 = vadd.f32 %v2815_v13, %v861_v29 }
 0x248   : > { %v873_v31 = vadd.f32 %v2032_v39, %v2815_v13  ;;  %v864_v32 = vpop.f32.mrb[23].mxu0 }
 0x249   : > { %v865_v35 = vadd.f32 %v2815_v13, %v864_v32 }
 0x24a   : > { %v1748_v37 = vpack.c.bf16 %v873_v31, %v870_v30 }
 0x24b   : > { %v1743_v41 = vpack.c.bf16 %v865_v35, %v862_v33 }
 0x24c   : > { %1892 = vst [vmem:[%s2822_s26 + $0x18] sm:$0xff] %v1748_v37  }
 0x24d   : > { %1891 = vst [vmem:[%s2822_s26 + $0x10] sm:$0xff] %v1743_v41   ;;  %v2035_v47 = vpop.f32.mrb[24].mxu0  ;;  %v2051_v49 = vpop.f32.mrb[0].mxu1 }
 0x24e   : > { %v877_v50 = vpop.f32.mrb[25].mxu0  ;;  %v941_v51 = vpop.f32.mrb[1].mxu1  ;;  %v886_v40 = vadd.f32 %v2035_v47, %v2815_v13  ;;  %v950_v44 = vadd.f32 %v2051_v49, %v2815_v13 }
 0x24f   : > { %v2036_v55 = vpop.f32.mrb[26].mxu0  ;;  %v2052_v56 = vpop.f32.mrb[2].mxu1  ;;  %v878_v61 = vadd.f32 %v2815_v13, %v877_v50  ;;  %v942_v1 = vadd.f32 %v2815_v13, %v941_v51 }
 0x250   : > { %v889_v57 = vadd.f32 %v2036_v55, %v2815_v13  ;;  %v953_v58 = vadd.f32 %v2052_v56, %v2815_v13  ;;  %v880_v52 = vpop.f32.mrb[27].mxu0  ;;  %v944_v42 = vpop.f32.mrb[3].mxu1 }
 0x251   : > { %v881_v2 = vadd.f32 %v2815_v13, %v880_v52  ;;  %v945_v48 = vadd.f32 %v2815_v13, %v944_v42 }
 0x252   : > { %v1758_v3 = vpack.c.bf16 %v889_v57, %v886_v40  ;;  %v1798_v14 = vpack.c.bf16 %v953_v58, %v950_v44 }
 0x253   : > { %v1753_v6 = vpack.c.bf16 %v881_v2, %v878_v61  ;;  %v1793_v17 = vpack.c.bf16 %v945_v48, %v942_v1 }
 0x254   : > { %1894 = vst [vmem:[%s2822_s26 + $0x28] sm:$0xff] %v1758_v3   ;;  %1902 = vst [vmem:[%s2822_s26 + $0x68] sm:$0xff] %v1798_v14  }
 0x255   : > { %1893 = vst [vmem:[%s2822_s26 + $0x20] sm:$0xff] %v1753_v6   ;;  %1901 = vst [vmem:[%s2822_s26 + $0x60] sm:$0xff] %v1793_v17   ;;  %v2039_v22 = vpop.f32.mrb[28].mxu0  ;;  %v2055_v7 = vpop.f32.mrb[4].mxu1 }
 0x256   : > { %v893_v24 = vpop.f32.mrb[29].mxu0  ;;  %v957_v10 = vpop.f32.mrb[5].mxu1  ;;  %v902_v19 = vadd.f32 %v2039_v22, %v2815_v13  ;;  %v966_v9 = vadd.f32 %v2055_v7, %v2815_v13 }
 0x257   : > { %v2040_v36 = vpop.f32.mrb[30].mxu0  ;;  %v2056_v8 = vpop.f32.mrb[6].mxu1  ;;  %v894_v16 = vadd.f32 %v2815_v13, %v893_v24  ;;  %v958_v5 = vadd.f32 %v2815_v13, %v957_v10 }
 0x258   : > { %v905_v11 = vadd.f32 %v2040_v36, %v2815_v13  ;;  %v969_v12 = vadd.f32 %v2056_v8, %v2815_v13  ;;  %v896_v59 = vpop.f32.mrb[31].mxu0  ;;  %v960_v15 = vpop.f32.mrb[7].mxu1 }
 0x259   : > { %v897_v54 = vadd.f32 %v2815_v13, %v896_v59  ;;  %v961_v0 = vadd.f32 %v2815_v13, %v960_v15 }
 0x25a   : > { %v1768_v45 = vpack.c.bf16 %v905_v11, %v902_v19  ;;  %v1808_v20 = vpack.c.bf16 %v969_v12, %v966_v9 }
 0x25b   : > { %v1763_v60 = vpack.c.bf16 %v897_v54, %v894_v16  ;;  %v1803_v21 = vpack.c.bf16 %v961_v0, %v958_v5 }
 0x25c   : > { %1896 = vst [vmem:[%s2822_s26 + $0x38] sm:$0xff] %v1768_v45   ;;  %1904 = vst [vmem:[%s2822_s26 + $0x78] sm:$0xff] %v1808_v20  }
 0x25d   : > { %1895 = vst [vmem:[%s2822_s26 + $0x30] sm:$0xff] %v1763_v60   ;;  %1903 = vst [vmem:[%s2822_s26 + $0x70] sm:$0xff] %v1803_v21   ;;  %v2043_v23 = vpop.f32.mrb[32].mxu0  ;;  %v2059_v25 = vpop.f32.mrb[8].mxu1 }
 0x25e   : > { %v909_v38 = vpop.f32.mrb[33].mxu0  ;;  %v973_v46 = vpop.f32.mrb[9].mxu1  ;;  %v918_v63 = vadd.f32 %v2043_v23, %v2815_v13  ;;  %v982_v4 = vadd.f32 %v2059_v25, %v2815_v13 }
 0x25f   : > { %v2044_v26 = vpop.f32.mrb[34].mxu0  ;;  %v2060_v62 = vpop.f32.mrb[10].mxu1  ;;  %v910_v27 = vadd.f32 %v2815_v13, %v909_v38  ;;  %v974_v28 = vadd.f32 %v2815_v13, %v973_v46 }
 0x260   : > { %v921_v34 = vadd.f32 %v2044_v26, %v2815_v13  ;;  %v985_v43 = vadd.f32 %v2060_v62, %v2815_v13  ;;  %v912_v53 = vpop.f32.mrb[35].mxu0  ;;  %v976_v18 = vpop.f32.mrb[11].mxu1 }
 0x261   : > { %v913_v29 = vadd.f32 %v2815_v13, %v912_v53  ;;  %v977_v39 = vadd.f32 %v2815_v13, %v976_v18 }
 0x262   : > { %v1778_v30 = vpack.c.bf16 %v921_v34, %v918_v63  ;;  %v1818_v31 = vpack.c.bf16 %v985_v43, %v982_v4 }
 0x263   : > { %v1773_v32 = vpack.c.bf16 %v913_v29, %v910_v27  ;;  %v1813_v33 = vpack.c.bf16 %v977_v39, %v974_v28 }
 0x264   : > { %1898 = vst [vmem:[%s2822_s26 + $0x48] sm:$0xff] %v1778_v30   ;;  %1906 = vst [vmem:[%s2822_s26 + $0x88] sm:$0xff] %v1818_v31  }
 0x265   : > { %1897 = vst [vmem:[%s2822_s26 + $0x40] sm:$0xff] %v1773_v32   ;;  %1905 = vst [vmem:[%s2822_s26 + $0x80] sm:$0xff] %v1813_v33   ;;  %v2047_v35 = vpop.f32.mrb[36].mxu0  ;;  %v2063_v37 = vpop.f32.mrb[12].mxu1 }
 0x266   : > { %v925_v41 = vpop.f32.mrb[37].mxu0  ;;  %v989_v47 = vpop.f32.mrb[13].mxu1  ;;  %v934_v51 = vadd.f32 %v2047_v35, %v2815_v13  ;;  %v998_v55 = vadd.f32 %v2063_v37, %v2815_v13 }
 0x267   : > { %v2048_v49 = vpop.f32.mrb[38].mxu0  ;;  %v2064_v50 = vpop.f32.mrb[14].mxu1  ;;  %v926_v58 = vadd.f32 %v2815_v13, %v925_v41  ;;  %v990_v52 = vadd.f32 %v2815_v13, %v989_v47 }
 0x268   : > { %v937_v56 = vadd.f32 %v2048_v49, %v2815_v13  ;;  %v1001_v40 = vadd.f32 %v2064_v50, %v2815_v13  ;;  %v928_v44 = vpop.f32.mrb[39].mxu0  ;;  %v992_v57 = vpop.f32.mrb[15].mxu1 }
 0x269   : > { %v929_v42 = vadd.f32 %v2815_v13, %v928_v44  ;;  %v993_v61 = vadd.f32 %v2815_v13, %v992_v57 }
 0x26a   : > { %v1788_v1 = vpack.c.bf16 %v937_v56, %v934_v51  ;;  %v1828_v2 = vpack.c.bf16 %v1001_v40, %v998_v55 }
 0x26b   : > { %v1783_v48 = vpack.c.bf16 %v929_v42, %v926_v58  ;;  %v1823_v3 = vpack.c.bf16 %v993_v61, %v990_v52 }
 0x26c   : > { %1900 = vst [vmem:[%s2822_s26 + $0x58] sm:$0xff] %v1788_v1   ;;  %1908 = vst [vmem:[%s2822_s26 + $0x98] sm:$0xff] %v1828_v2  }
 0x26d   : > { %1899 = vst [vmem:[%s2822_s26 + $0x50] sm:$0xff] %v1783_v48   ;;  %1907 = vst [vmem:[%s2822_s26 + $0x90] sm:$0xff] %v1823_v3   ;;  %v2067_v14 = vpop.f32.mrb[16].mxu1 }
 0x26e   : > { %v1005_v6 = vpop.f32.mrb[17].mxu1  ;;  %v1014_v22 = vadd.f32 %v2067_v14, %v2815_v13 }
 0x26f   : > { %v2068_v17 = vpop.f32.mrb[18].mxu1  ;;  %v1006_v10 = vadd.f32 %v2815_v13, %v1005_v6 }
 0x270   : > { %v1017_v7 = vadd.f32 %v2068_v17, %v2815_v13  ;;  %v1008_v24 = vpop.f32.mrb[19].mxu1 }
 0x271   : > { %v1009_v36 = vadd.f32 %v2815_v13, %v1008_v24 }
 0x272   : > { %v1838_v8 = vpack.c.bf16 %v1017_v7, %v1014_v22 }
 0x273   : > { %v1833_v19 = vpack.c.bf16 %v1009_v36, %v1006_v10 }
 0x274   : > { %1910 = vst [vmem:[%s2822_s26 + $0xa8] sm:$0xff] %v1838_v8  }
 0x275   : > { %1909 = vst [vmem:[%s2822_s26 + $0xa0] sm:$0xff] %v1833_v19   ;;  %v2071_v9 = vpop.f32.mrb[20].mxu1 }
 0x276   : > { %v1021_v11 = vpop.f32.mrb[21].mxu1  ;;  %v1030_v59 = vadd.f32 %v2071_v9, %v2815_v13 }
 0x277   : > { %v2072_v12 = vpop.f32.mrb[22].mxu1  ;;  %v1022_v5 = vadd.f32 %v2815_v13, %v1021_v11 }
 0x278   : > { %v1033_v15 = vadd.f32 %v2072_v12, %v2815_v13  ;;  %v1024_v16 = vpop.f32.mrb[23].mxu1 }
 0x279   : > { %v1025_v54 = vadd.f32 %v2815_v13, %v1024_v16 }
 0x27a   : > { %v1848_v0 = vpack.c.bf16 %v1033_v15, %v1030_v59 }
 0x27b   : > { %v1843_v45 = vpack.c.bf16 %v1025_v54, %v1022_v5 }
 0x27c   : > { %1912 = vst [vmem:[%s2822_s26 + $0xb8] sm:$0xff] %v1848_v0  }
 0x27d   : > { %1911 = vst [vmem:[%s2822_s26 + $0xb0] sm:$0xff] %v1843_v45   ;;  %v2075_v20 = vpop.f32.mrb[24].mxu1 }
 0x27e   : > { %v1037_v60 = vpop.f32.mrb[25].mxu1  ;;  %v1046_v23 = vadd.f32 %v2075_v20, %v2815_v13 }
 0x27f   : > { %v2076_v21 = vpop.f32.mrb[26].mxu1  ;;  %v1038_v46 = vadd.f32 %v2815_v13, %v1037_v60 }
 0x280   : > { %v1049_v25 = vadd.f32 %v2076_v21, %v2815_v13  ;;  %v1040_v38 = vpop.f32.mrb[27].mxu1 }
 0x281   : > { %v1041_v26 = vadd.f32 %v2815_v13, %v1040_v38 }
 0x282   : > { %v1858_v62 = vpack.c.bf16 %v1049_v25, %v1046_v23 }
 0x283   : > { %v1853_v63 = vpack.c.bf16 %v1041_v26, %v1038_v46 }
 0x284   : > { %1914 = vst [vmem:[%s2822_s26 + $0xc8] sm:$0xff] %v1858_v62  }
 0x285   : > { %1913 = vst [vmem:[%s2822_s26 + $0xc0] sm:$0xff] %v1853_v63   ;;  %v2079_v4 = vpop.f32.mrb[28].mxu1 }
 0x286   : > { %v1053_v34 = vpop.f32.mrb[29].mxu1  ;;  %v1062_v53 = vadd.f32 %v2079_v4, %v2815_v13 }
 0x287   : > { %v2080_v43 = vpop.f32.mrb[30].mxu1  ;;  %v1054_v28 = vadd.f32 %v2815_v13, %v1053_v34 }
 0x288   : > { %v1065_v18 = vadd.f32 %v2080_v43, %v2815_v13  ;;  %v1056_v27 = vpop.f32.mrb[31].mxu1 }
 0x289   : > { %v1057_v29 = vadd.f32 %v2815_v13, %v1056_v27 }
 0x28a   : > { %v1868_v39 = vpack.c.bf16 %v1065_v18, %v1062_v53 }
 0x28b   : > { %v1863_v30 = vpack.c.bf16 %v1057_v29, %v1054_v28 }
 0x28c   : > { %1916 = vst [vmem:[%s2822_s26 + $0xd8] sm:$0xff] %v1868_v39  }
 0x28d   : > { %1915 = vst [vmem:[%s2822_s26 + $0xd0] sm:$0xff] %v1863_v30   ;;  %v2083_v31 = vpop.f32.mrb[32].mxu1 }
 0x28e   : > { %v1069_v32 = vpop.f32.mrb[33].mxu1  ;;  %v1078_v35 = vadd.f32 %v2083_v31, %v2815_v13 }
 0x28f   : > { %v2084_v33 = vpop.f32.mrb[34].mxu1  ;;  %v1070_v47 = vadd.f32 %v2815_v13, %v1069_v32 }
 0x290   : > { %v1081_v37 = vadd.f32 %v2084_v33, %v2815_v13  ;;  %v1072_v41 = vpop.f32.mrb[35].mxu1 }
 0x291   : > { %v1073_v49 = vadd.f32 %v2815_v13, %v1072_v41 }
 0x292   : > { %v1878_v50 = vpack.c.bf16 %v1081_v37, %v1078_v35 }
 0x293   : > { %v1873_v51 = vpack.c.bf16 %v1073_v49, %v1070_v47 }
 0x294   : > { %1918 = vst [vmem:[%s2822_s26 + $0xe8] sm:$0xff] %v1878_v50  }
 0x295   : > { %1917 = vst [vmem:[%s2822_s26 + $0xe0] sm:$0xff] %v1873_v51   ;;  %v2087_v55 = vpop.f32.mrb[36].mxu1 }
 0x296   : > { %v1085_v56 = vpop.f32.mrb[37].mxu1  ;;  %v1094_v44 = vadd.f32 %v2087_v55, %v2815_v13 }
 0x297   : > { %v2088_v40 = vpop.f32.mrb[38].mxu1  ;;  %v1086_v52 = vadd.f32 %v2815_v13, %v1085_v56 }
 0x298   : > { %v1097_v57 = vadd.f32 %v2088_v40, %v2815_v13  ;;  %v1088_v58 = vpop.f32.mrb[39].mxu1 }
 0x299   : > { %v1089_v42 = vadd.f32 %v2815_v13, %v1088_v58 }
 0x29a   : > { %v1888_v61 = vpack.c.bf16 %v1097_v57, %v1094_v44 }
 0x29b   : > { %v1883_v1 = vpack.c.bf16 %v1089_v42, %v1086_v52 }
 0x29c   : > { %1920 = vst [vmem:[%s2822_s26 + $0xf8] sm:$0xff] %v1888_v61  }
 0x29d   : > { %1919 = vst [vmem:[%s2822_s26 + $0xf0] sm:$0xff] %v1883_v1  }
 0x29e   : > { %s1729_s10 = sshll.u32 %s2411_s25, 10  ;;  %s1450_s15 = sshll.u32 %s2822_s26, 4  ;;  %s1451_s15 = int_to_ptr.vmem [resolvable:$true] %s1450_s15 }
 0x29f   : > { %s1433_s12 = scalar_lea.hbm %s2960_s6, %s1729_s10  ;;  %s2348_s27 = smov 1024  }
 0x2a0   : > { %p2974_p11 = scmp.ne.s32.totalorder %s2969_s9, 0  ;;  %s2349_s30 = smov 2048  }
 0x2a1   : > { %s2350_s29 = smov 16   ;;  %s2351_s19 = smov 64  }
 0x2a2   : > { %2115 = sst [smem:[#allocation10]] (%p2974_p11), %s2348_s27  ;;  %s2352_s25 = smov 4  }
 0x2a3   : > { %2116 = sst [smem:[#allocation10 + $0x1]] (%p2974_p11), %s2349_s30  ;;  %s2353_s20 = smov [#allocation9]  }
 0x2a4   : > { %2117 = sst [smem:[#allocation10 + $0x2]] (%p2974_p11), %s2350_s29  ;;  %s2354_s16 = smov 0  }
 0x2a5   : > { %2118 = sst [smem:[#allocation10 + $0x3]] (%p2974_p11), %s2351_s19 }
 0x2a6   : > { %2119 = sst [smem:[#allocation10 + $0x4]] (%p2974_p11), %s2351_s19 }
 0x2a7   : > { %2120 = sst [smem:[#allocation10 + $0x5]] (%p2974_p11), %s2352_s25 }
 0x2a8   : > { %2121 = dma.general (%p2974_p11), %s1451_s15, 4096, %s1433_s12, %s1421_s13, %s2353_s20, [#allocation10], %s2354_s16, 0  }
 0x2a9 PF: > { %s1478_s17 = sand.u32 1, %s2328_s21   ;;  %p2975_p0 = scmp.ne.s32.totalorder %s2965_s28, 0 }
 0x2aa   : > { %p2976_p2 = scmp.ge.s32.totalorder %s2340_s24, 2  ;;  %s1479_s18 = scalar_lea.sflag [#allocation4], %s1478_s17 }
 0x2ac   : > { %p2135_p3 = pnand %p2976_p2, %p2975_p0 }
 0x2ae   : > { %2323 = dma.done.wait (!%p2135_p3), %s1479_s18, 4096  }
 0x2af   : > { %2325 = vsyncadd (!%p2135_p3), %s1479_s18, 4294963200  ;;  %p20_p7 = scmp.ge.s32.totalorder %s2506_s8, 4   ;;  %s2977_s21 = smov %s2332_s22 }
 0x2b0   : > { %s2978_s22 = smov %s2336_s23  ;;  %s2979_s23 = smov %s2522_s11 }
 0x2b1   : > { %s2980_s24 = smov %s2506_s8  ;;  %22 = sbr.rel (!%p20_p7) target bundleno = 6 (0x6), region = 102 }
 0x2b8   :  { %1484 = vsyncpa [#allocation3], 1 }
 0x2b9   :  { %1486 = vsyncpa [#allocation3 + $0x1], 1 }
 0x2ba   :  { %1487 = vsyncpa [#allocation6], 1 }
 0x2bb   :  { %1488 = vsyncpa [#allocation4], 1 }
 0x2bc   :  { %1490 = vsyncpa [#allocation4 + $0x1], 1 }

</bundles_post_ra>
